<compile_context>
chip_gen: v5e
topology: v5e:2x2
jax: 0.10.0
libtpu: 0.0.40
codegen_flags: <defaults>
</compile_context>

<pallas_src>
import jax
import jax.numpy as jnp
from jax import lax
from jax.experimental import pallas as pl
from jax.experimental.pallas import tpu as pltpu


def _local_graph_kernel(adjT_ref, embT_ref, cmaskT_ref, noise_ref, scores_ref,
                        lhs_s, prod_s):
    """Single-invocation kernel (grid=(1,)).

    Transposed layout: adjT[j, i] = adj[i, j]; embT = embeds.T with shape (D, N);
    per-node vectors (order / num / scores) are lane-dense (1, N) rows.
    lhs_s / prod_s are (D + 16, N) VMEM staging buffers for the fused matmul.
    """
    D, N = embT_ref.shape
    depth = cmaskT_ref.shape[0]
    ONES_ROW = D          # sublane-aligned (D % 8 == 0): product row = next order
    NUM_ROW = D + 8       # sublane-aligned: product row = adj @ num

    # ---- init: fstEmbeds = adj @ embeds - embeds ; fstNum = order_0 = rowsum(adj) ----
    lhs_s[pl.ds(0, D), :] = embT_ref[...]
    lhs_s[pl.ds(D, 16), :] = jnp.zeros((16, N), jnp.float32)
    lhs_s[pl.ds(ONES_ROW, 1), :] = jnp.ones((1, N), jnp.float32)
    prod_s[...] = jnp.dot(lhs_s[...], adjT_ref[...],
                          preferred_element_type=jnp.float32)
    o = prod_s[pl.ds(ONES_ROW, 1), :]                  # (1, N) order_0 (ones @ adjT)
    e_fst = prod_s[pl.ds(0, D), :] - embT_ref[...]     # (D, N) fstEmbeds^T
    lhs_s[pl.ds(0, D), :] = e_fst                      # current emb state
    lhs_s[pl.ds(NUM_ROW, 1), :] = o                    # current num state = fstNum
    emb_sum = e_fst
    num_sum = o

    # ---- depth loop (statically unrolled): ONE fused MXU matmul per depth ----
    for i in range(depth):
        a = adjT_ref[...] * cmaskT_ref[i]              # cumulative sparse_dropout mask
        prod_s[...] = jnp.dot(lhs_s[...], a, preferred_element_type=jnp.float32)
        e_prev = lhs_s[pl.ds(0, D), :]
        n_prev = lhs_s[pl.ds(NUM_ROW, 1), :]
        # emb_{k+1} = adj@emb_k - emb_k - order*emb_k ; num_{k+1} = adj@num_k - num_k - order
        e_next = prod_s[pl.ds(0, D), :] - e_prev - o * e_prev
        n_next = prod_s[pl.ds(NUM_ROW, 1), :] - n_prev - o
        o = prod_s[pl.ds(ONES_ROW, 1), :]              # order for the next depth (free: ones row)
        lhs_s[pl.ds(0, D), :] = e_next
        lhs_s[pl.ds(NUM_ROW, 1), :] = n_next
        emb_sum = emb_sum + e_next
        num_sum = num_sum + n_next

    # ---- finalize: sign(num)-signed cosine(emb_sum, embeds) + Gumbel noise ----
    s = num_sum + 1e-8
    sgn = jnp.where(s >= 0.0, 1.0, -1.0)               # sign of the (cancelled) num division
    e0 = embT_ref[...]
    ss_sub = jnp.sum(emb_sum * emb_sum, axis=0, keepdims=True)   # (1, N)
    ss_e0 = jnp.sum(e0 * e0, axis=0, keepdims=True)              # (1, N)
    dp = jnp.sum(emb_sum * e0, axis=0, keepdims=True)            # (1, N)
    inv_sub = lax.rsqrt(jnp.maximum(ss_sub, 1e-24))    # == 1 / max(||.||, 1e-12)
    inv_e0 = lax.rsqrt(jnp.maximum(ss_e0, 1e-24))
    scores = sgn * dp * inv_sub * inv_e0 + noise_ref[...]
    scores_ref[...] = scores.astype(scores_ref.dtype)  # lane-dense (1, N) store


def local_graph_scores(adj, embeds, keep_masks, noise):
    """adj: (N, N) dense adjacency f32; embeds: (N, D) f32;
    keep_masks: (mask_depth, N, N) {0,1} f32 (one sparse_dropout mask per depth);
    noise: (N,) f32 Gumbel noise.  Returns scores (N,) f32."""
    N, D = embeds.shape
    depth = keep_masks.shape[0]
    assert depth >= 1, "mask_depth must be >= 1 for the kernel path"
    assert D % 8 == 0, "embedding dim should be a multiple of 8 for aligned sublane rows"

    # Transpose once in the wrapper so the node axis is lane-dense inside the kernel,
    # and precompute cumulative keep-masks (cum[i] = prod mask[0..i]) so the kernel
    # never carries a progressively-masked adjacency.
    adjT = jnp.transpose(adj).astype(jnp.float32)                 # (N, N)
    embT = jnp.transpose(embeds).astype(jnp.float32)              # (D, N)
    cum_masks = jnp.cumprod(keep_masks.astype(jnp.float32), axis=0)
    cum_masksT = jnp.transpose(cum_masks, (0, 2, 1))              # (depth, N, N)
    noise2 = noise.reshape(1, N).astype(jnp.float32)

    scores = pl.pallas_call(
        _local_graph_kernel,
        out_shape=jax.ShapeDtypeStruct((1, N), jnp.float32),
        grid=(1,),                                     # single step: depth loop is in-kernel
        in_specs=[
            pl.BlockSpec((N, N), lambda i: (0, 0)),          # adjT (original, undropped)
            pl.BlockSpec((D, N), lambda i: (0, 0)),          # embT
            pl.BlockSpec((depth, N, N), lambda i: (0, 0, 0)),  # all cumulative keep-masks
            pl.BlockSpec((1, N), lambda i: (0, 0)),          # gumbel noise row
        ],
        out_specs=pl.BlockSpec((1, N), lambda i: (0, 0)),    # lane-dense score row
        scratch_shapes=[
            pltpu.VMEM((D + 16, N), jnp.float32),  # lhs_s: fused [emb | ones | num] LHS
            pltpu.VMEM((D + 16, N), jnp.float32),  # prod_s: fused matmul product
        ],
        compiler_params=pltpu.CompilerParams(
            dimension_semantics=("arbitrary",),
        ),
    )(adjT, embT, cum_masksT, noise2)
    return scores[0]


def local_graph_forward(adj, embeds, keep_masks, noise, num_mask_cand):
    scores = local_graph_scores(adj, embeds, keep_masks, noise)
    _, candidates = lax.top_k(scores, num_mask_cand)
    return scores, candidates


if __name__ == "__main__":
    # cfg: mask_depth=2, path_prob=0.5, num_mask_cand=8, N=128 nodes, D=32 dims
    N, D = 128, 32
    mask_depth = 2
    path_prob = 0.5
    num_mask_cand = 8

    key = jax.random.PRNGKey(0)
    k_adj, k_val, k_emb, k_msk, k_noise = jax.random.split(key, 5)

    # sparse-pattern adjacency (~10% nonzero), positive edge weights, stored dense
    pattern = (jax.random.uniform(k_adj, (N, N)) < 0.1).astype(jnp.float32)
    values = jax.random.uniform(k_val, (N, N), dtype=jnp.float32)
    adj = pattern * values

    embeds = jax.random.normal(k_emb, (N, D), dtype=jnp.float32)

    # sparse_dropout keep-masks: keep prob = path_prob ** (i+1), no rescaling (matches torch)
    mkeys = jax.random.split(k_msk, mask_depth)
    keep_masks = jnp.stack([
        (jax.random.uniform(mkeys[i], (N, N)) < path_prob ** (i + 1)).astype(jnp.float32)
        for i in range(mask_depth)
    ])

    # make_noise(): Gumbel noise
    u = jax.random.uniform(k_noise, (N,), dtype=jnp.float32)
    noise = -jnp.log(-jnp.log(u + 1e-8) + 1e-8)

    scores, candidates = local_graph_forward(adj, embeds, keep_masks, noise, num_mask_cand)
    scores = jax.block_until_ready(scores)
    candidates = jax.block_until_ready(candidates)

    # ---- pure-JAX reference (literal LocalGraph math) using the exact same masks / noise ----
    def ref_forward(adj, embeds, keep_masks, noise):
        hp = lax.Precision.HIGHEST
        order = adj.sum(-1, keepdims=True)
        fst = jnp.dot(adj, embeds, precision=hp) - embeds
        emb_cur, num_cur = fst, order
        emb_sum, num_sum = fst, order
        a = adj
        for i in range(keep_masks.shape[0]):
            a = a * keep_masks[i]
            emb_nxt = jnp.dot(a, emb_cur, precision=hp) - emb_cur - order * emb_cur
            num_nxt = jnp.dot(a, num_cur, precision=hp) - num_cur - order
            order = a.sum(-1, keepdims=True)
            emb_sum = emb_sum + emb_nxt
            num_sum = num_sum + num_nxt
            emb_cur, num_cur = emb_nxt, num_nxt
        sub = emb_sum / (num_sum + 1e-8)
        sub = sub / jnp.maximum(jnp.linalg.norm(sub, axis=-1, keepdims=True), 1e-12)
        e = embeds / jnp.maximum(jnp.linalg.norm(embeds, axis=-1, keepdims=True), 1e-12)
        return jnp.sum(sub * e, axis=-1) + noise

    ref = ref_forward(adj, embeds, keep_masks, noise)
    assert scores.shape == (N,) and candidates.shape == (num_mask_cand,)
    assert bool(jnp.allclose(scores, ref, atol=2e-2, rtol=2e-2)), "scores mismatch vs reference"
    print("KERNEL_OK")
</pallas_src>

<mosaic_0001>
module attributes {stable_mosaic.version = 11 : i64} {
  func.func @_local_graph_kernel(%arg0: i32, %arg1: memref<128x128xf32, #tpu.memory_space<vmem>>, %arg2: memref<32x128xf32, #tpu.memory_space<vmem>>, %arg3: memref<2x128x128xf32, #tpu.memory_space<vmem>>, %arg4: memref<1x128xf32, #tpu.memory_space<vmem>>, %arg5: memref<1x128xf32, #tpu.memory_space<vmem>>, %arg6: memref<48x128xf32, #tpu.memory_space<vmem>>, %arg7: memref<48x128xf32, #tpu.memory_space<vmem>>) attributes {dimension_semantics = [#tpu.dimension_semantics<arbitrary>], iteration_bounds = array<i64: 1>, scalar_prefetch = 0 : i64, scratch_operands = 2 : i64, tpu.core_type = #tpu.core_type<tc>, window_params = [{pipeline_mode = #tpu.pipeline_mode<synchronous>, transform_indices = @transform_0, window_bounds = array<i64: 128, 128>}, {pipeline_mode = #tpu.pipeline_mode<synchronous>, transform_indices = @transform_1, window_bounds = array<i64: 32, 128>}, {pipeline_mode = #tpu.pipeline_mode<synchronous>, transform_indices = @transform_2, window_bounds = array<i64: 2, 128, 128>}, {pipeline_mode = #tpu.pipeline_mode<synchronous>, transform_indices = @transform_3, window_bounds = array<i64: 1, 128>}, {pipeline_mode = #tpu.pipeline_mode<synchronous>, transform_indices = @transform_4, window_bounds = array<i64: 1, 128>}]} {
    %c0 = arith.constant 0 : index
    %c0_0 = arith.constant 0 : index
    %0 = vector.load %arg2[%c0, %c0_0] : memref<32x128xf32, #tpu.memory_space<vmem>>, vector<32x128xf32>
    %c0_1 = arith.constant 0 : index
    %c0_2 = arith.constant 0 : index
    %1 = vector.load %arg6[%c0_1, %c0_2] : memref<48x128xf32, #tpu.memory_space<vmem>>, vector<32x128xf32>
    tpu.vector_store %arg6[%c0_1, %c0_2], %0 {strides = array<i32>} : memref<48x128xf32, #tpu.memory_space<vmem>>, vector<32x128xf32>,
    %cst = arith.constant 0.000000e+00 : f32
    %2 = vector.broadcast %cst : f32 to vector<16x128xf32>
    %c32 = arith.constant 32 : index
    %c0_3 = arith.constant 0 : index
    %3 = vector.load %arg6[%c32, %c0_3] : memref<48x128xf32, #tpu.memory_space<vmem>>, vector<16x128xf32>
    tpu.vector_store %arg6[%c32, %c0_3], %2 {strides = array<i32>} : memref<48x128xf32, #tpu.memory_space<vmem>>, vector<16x128xf32>,
    %cst_4 = arith.constant 1.000000e+00 : f32
    %4 = vector.broadcast %cst_4 : f32 to vector<1x128xf32>
    %c32_5 = arith.constant 32 : index
    %c0_6 = arith.constant 0 : index
    %5 = vector.load %arg6[%c32_5, %c0_6] : memref<48x128xf32, #tpu.memory_space<vmem>>, vector<1x128xf32>
    tpu.vector_store %arg6[%c32_5, %c0_6], %4 {strides = array<i32>} : memref<48x128xf32, #tpu.memory_space<vmem>>, vector<1x128xf32>,
    %c0_7 = arith.constant 0 : index
    %c0_8 = arith.constant 0 : index
    %6 = vector.load %arg6[%c0_7, %c0_8] : memref<48x128xf32, #tpu.memory_space<vmem>>, vector<48x128xf32>
    %c0_9 = arith.constant 0 : index
    %c0_10 = arith.constant 0 : index
    %7 = vector.load %arg1[%c0_9, %c0_10] : memref<128x128xf32, #tpu.memory_space<vmem>>, vector<128x128xf32>
    %cst_11 = arith.constant dense<0.000000e+00> : vector<48x128xf32>
    %8 = tpu.matmul %6, %7, %cst_11 {dimension_numbers = #tpu.dot_dimension_numbers<[1], [0], [0], [1], [0, 0, 1, 1], [], []>} : vector<48x128xf32>, vector<128x128xf32>, vector<48x128xf32> -> vector<48x128xf32>
    %c0_12 = arith.constant 0 : index
    %c0_13 = arith.constant 0 : index
    %9 = vector.load %arg7[%c0_12, %c0_13] : memref<48x128xf32, #tpu.memory_space<vmem>>, vector<48x128xf32>
    tpu.vector_store %arg7[%c0_12, %c0_13], %8 {strides = array<i32>} : memref<48x128xf32, #tpu.memory_space<vmem>>, vector<48x128xf32>,
    %c32_14 = arith.constant 32 : index
    %c0_15 = arith.constant 0 : index
    %10 = vector.load %arg7[%c32_14, %c0_15] : memref<48x128xf32, #tpu.memory_space<vmem>>, vector<1x128xf32>
    %c0_16 = arith.constant 0 : index
    %c0_17 = arith.constant 0 : index
    %11 = vector.load %arg7[%c0_16, %c0_17] : memref<48x128xf32, #tpu.memory_space<vmem>>, vector<32x128xf32>
    %c0_18 = arith.constant 0 : index
    %c0_19 = arith.constant 0 : index
    %12 = vector.load %arg2[%c0_18, %c0_19] : memref<32x128xf32, #tpu.memory_space<vmem>>, vector<32x128xf32>
    %13 = arith.subf %11, %12 : vector<32x128xf32>
    %c0_20 = arith.constant 0 : index
    %c0_21 = arith.constant 0 : index
    %14 = vector.load %arg6[%c0_20, %c0_21] : memref<48x128xf32, #tpu.memory_space<vmem>>, vector<32x128xf32>
    tpu.vector_store %arg6[%c0_20, %c0_21], %13 {strides = array<i32>} : memref<48x128xf32, #tpu.memory_space<vmem>>, vector<32x128xf32>,
    %c40 = arith.constant 40 : index
    %c0_22 = arith.constant 0 : index
    %15 = vector.load %arg6[%c40, %c0_22] : memref<48x128xf32, #tpu.memory_space<vmem>>, vector<1x128xf32>
    tpu.vector_store %arg6[%c40, %c0_22], %10 {strides = array<i32>} : memref<48x128xf32, #tpu.memory_space<vmem>>, vector<1x128xf32>,
    %c0_23 = arith.constant 0 : index
    %c0_24 = arith.constant 0 : index
    %16 = vector.load %arg1[%c0_23, %c0_24] : memref<128x128xf32, #tpu.memory_space<vmem>>, vector<128x128xf32>
    %c0_25 = arith.constant 0 : index
    %c0_26 = arith.constant 0 : index
    %c0_27 = arith.constant 0 : index
    %17 = vector.load %arg3[%c0_25, %c0_26, %c0_27] : memref<2x128x128xf32, #tpu.memory_space<vmem>>, vector<1x128x128xf32>
    %18 = vector.shape_cast %17 : vector<1x128x128xf32> to vector<128x128xf32>
    %19 = arith.mulf %16, %18 : vector<128x128xf32>
    %c0_28 = arith.constant 0 : index
    %c0_29 = arith.constant 0 : index
    %20 = vector.load %arg6[%c0_28, %c0_29] : memref<48x128xf32, #tpu.memory_space<vmem>>, vector<48x128xf32>
    %cst_30 = arith.constant dense<0.000000e+00> : vector<48x128xf32>
    %21 = tpu.matmul %20, %19, %cst_30 {dimension_numbers = #tpu.dot_dimension_numbers<[1], [0], [0], [1], [0, 0, 1, 1], [], []>} : vector<48x128xf32>, vector<128x128xf32>, vector<48x128xf32> -> vector<48x128xf32>
    %c0_31 = arith.constant 0 : index
    %c0_32 = arith.constant 0 : index
    %22 = vector.load %arg7[%c0_31, %c0_32] : memref<48x128xf32, #tpu.memory_space<vmem>>, vector<48x128xf32>
    tpu.vector_store %arg7[%c0_31, %c0_32], %21 {strides = array<i32>} : memref<48x128xf32, #tpu.memory_space<vmem>>, vector<48x128xf32>,
    %c0_33 = arith.constant 0 : index
    %c0_34 = arith.constant 0 : index
    %23 = vector.load %arg6[%c0_33, %c0_34] : memref<48x128xf32, #tpu.memory_space<vmem>>, vector<32x128xf32>
    %c40_35 = arith.constant 40 : index
    %c0_36 = arith.constant 0 : index
    %24 = vector.load %arg6[%c40_35, %c0_36] : memref<48x128xf32, #tpu.memory_space<vmem>>, vector<1x128xf32>
    %c0_37 = arith.constant 0 : index
    %c0_38 = arith.constant 0 : index
    %25 = vector.load %arg7[%c0_37, %c0_38] : memref<48x128xf32, #tpu.memory_space<vmem>>, vector<32x128xf32>
    %26 = arith.subf %25, %23 : vector<32x128xf32>
    %27 = vector.broadcast %10 : vector<1x128xf32> to vector<32x128xf32>
    %28 = arith.mulf %27, %23 : vector<32x128xf32>
    %29 = arith.subf %26, %28 : vector<32x128xf32>
    %c40_39 = arith.constant 40 : index
    %c0_40 = arith.constant 0 : index
    %30 = vector.load %arg7[%c40_39, %c0_40] : memref<48x128xf32, #tpu.memory_space<vmem>>, vector<1x128xf32>
    %31 = arith.subf %30, %24 : vector<1x128xf32>
    %32 = arith.subf %31, %10 : vector<1x128xf32>
    %c32_41 = arith.constant 32 : index
    %c0_42 = arith.constant 0 : index
    %33 = vector.load %arg7[%c32_41, %c0_42] : memref<48x128xf32, #tpu.memory_space<vmem>>, vector<1x128xf32>
    %c0_43 = arith.constant 0 : index
    %c0_44 = arith.constant 0 : index
    %34 = vector.load %arg6[%c0_43, %c0_44] : memref<48x128xf32, #tpu.memory_space<vmem>>, vector<32x128xf32>
    tpu.vector_store %arg6[%c0_43, %c0_44], %29 {strides = array<i32>} : memref<48x128xf32, #tpu.memory_space<vmem>>, vector<32x128xf32>,
    %c40_45 = arith.constant 40 : index
    %c0_46 = arith.constant 0 : index
    %35 = vector.load %arg6[%c40_45, %c0_46] : memref<48x128xf32, #tpu.memory_space<vmem>>, vector<1x128xf32>
    tpu.vector_store %arg6[%c40_45, %c0_46], %32 {strides = array<i32>} : memref<48x128xf32, #tpu.memory_space<vmem>>, vector<1x128xf32>,
    %36 = arith.addf %13, %29 : vector<32x128xf32>
    %37 = arith.addf %10, %32 : vector<1x128xf32>
    %c0_47 = arith.constant 0 : index
    %c0_48 = arith.constant 0 : index
    %38 = vector.load %arg1[%c0_47, %c0_48] : memref<128x128xf32, #tpu.memory_space<vmem>>, vector<128x128xf32>
    %c1 = arith.constant 1 : index
    %c0_49 = arith.constant 0 : index
    %c0_50 = arith.constant 0 : index
    %39 = vector.load %arg3[%c1, %c0_49, %c0_50] : memref<2x128x128xf32, #tpu.memory_space<vmem>>, vector<1x128x128xf32>
    %40 = vector.shape_cast %39 : vector<1x128x128xf32> to vector<128x128xf32>
    %41 = arith.mulf %38, %40 : vector<128x128xf32>
    %c0_51 = arith.constant 0 : index
    %c0_52 = arith.constant 0 : index
    %42 = vector.load %arg6[%c0_51, %c0_52] : memref<48x128xf32, #tpu.memory_space<vmem>>, vector<48x128xf32>
    %cst_53 = arith.constant dense<0.000000e+00> : vector<48x128xf32>
    %43 = tpu.matmul %42, %41, %cst_53 {dimension_numbers = #tpu.dot_dimension_numbers<[1], [0], [0], [1], [0, 0, 1, 1], [], []>} : vector<48x128xf32>, vector<128x128xf32>, vector<48x128xf32> -> vector<48x128xf32>
    %c0_54 = arith.constant 0 : index
    %c0_55 = arith.constant 0 : index
    %44 = vector.load %arg7[%c0_54, %c0_55] : memref<48x128xf32, #tpu.memory_space<vmem>>, vector<48x128xf32>
    tpu.vector_store %arg7[%c0_54, %c0_55], %43 {strides = array<i32>} : memref<48x128xf32, #tpu.memory_space<vmem>>, vector<48x128xf32>,
    %c0_56 = arith.constant 0 : index
    %c0_57 = arith.constant 0 : index
    %45 = vector.load %arg6[%c0_56, %c0_57] : memref<48x128xf32, #tpu.memory_space<vmem>>, vector<32x128xf32>
    %c40_58 = arith.constant 40 : index
    %c0_59 = arith.constant 0 : index
    %46 = vector.load %arg6[%c40_58, %c0_59] : memref<48x128xf32, #tpu.memory_space<vmem>>, vector<1x128xf32>
    %c0_60 = arith.constant 0 : index
    %c0_61 = arith.constant 0 : index
    %47 = vector.load %arg7[%c0_60, %c0_61] : memref<48x128xf32, #tpu.memory_space<vmem>>, vector<32x128xf32>
    %48 = arith.subf %47, %45 : vector<32x128xf32>
    %49 = vector.broadcast %33 : vector<1x128xf32> to vector<32x128xf32>
    %50 = arith.mulf %49, %45 : vector<32x128xf32>
    %51 = arith.subf %48, %50 : vector<32x128xf32>
    %c40_62 = arith.constant 40 : index
    %c0_63 = arith.constant 0 : index
    %52 = vector.load %arg7[%c40_62, %c0_63] : memref<48x128xf32, #tpu.memory_space<vmem>>, vector<1x128xf32>
    %53 = arith.subf %52, %46 : vector<1x128xf32>
    %54 = arith.subf %53, %33 : vector<1x128xf32>
    %c0_64 = arith.constant 0 : index
    %c0_65 = arith.constant 0 : index
    %55 = vector.load %arg6[%c0_64, %c0_65] : memref<48x128xf32, #tpu.memory_space<vmem>>, vector<32x128xf32>
    tpu.vector_store %arg6[%c0_64, %c0_65], %51 {strides = array<i32>} : memref<48x128xf32, #tpu.memory_space<vmem>>, vector<32x128xf32>,
    %c40_66 = arith.constant 40 : index
    %c0_67 = arith.constant 0 : index
    %56 = vector.load %arg6[%c40_66, %c0_67] : memref<48x128xf32, #tpu.memory_space<vmem>>, vector<1x128xf32>
    tpu.vector_store %arg6[%c40_66, %c0_67], %54 {strides = array<i32>} : memref<48x128xf32, #tpu.memory_space<vmem>>, vector<1x128xf32>,
    %57 = arith.addf %36, %51 : vector<32x128xf32>
    %58 = arith.addf %37, %54 : vector<1x128xf32>
    %cst_68 = arith.constant 9.99999993E-9 : f32
    %59 = vector.broadcast %cst_68 : f32 to vector<1x128xf32>
    %60 = arith.addf %58, %59 : vector<1x128xf32>
    %cst_69 = arith.constant 0.000000e+00 : f32
    %61 = vector.broadcast %cst_69 : f32 to vector<1x128xf32>
    %62 = arith.cmpf oge, %60, %61 : vector<1x128xf32>
    %cst_70 = arith.constant 1.000000e+00 : f32
    %cst_71 = arith.constant -1.000000e+00 : f32
    %63 = vector.broadcast %cst_70 : f32 to vector<1x128xf32>
    %64 = vector.broadcast %cst_71 : f32 to vector<1x128xf32>
    %65 = arith.select %62, %63, %64 : vector<1x128xi1>, vector<1x128xf32>
    %c0_72 = arith.constant 0 : index
    %c0_73 = arith.constant 0 : index
    %66 = vector.load %arg2[%c0_72, %c0_73] : memref<32x128xf32, #tpu.memory_space<vmem>>, vector<32x128xf32>
    %67 = arith.mulf %57, %57 : vector<32x128xf32>
    %cst_74 = arith.constant dense<0.000000e+00> : vector<128xf32>
    %68 = vector.multi_reduction <add>, %67, %cst_74 [0] : vector<32x128xf32> to vector<128xf32>
    %69 = vector.shape_cast %68 : vector<128xf32> to vector<1x128xf32>
    %70 = arith.mulf %66, %66 : vector<32x128xf32>
    %cst_75 = arith.constant dense<0.000000e+00> : vector<128xf32>
    %71 = vector.multi_reduction <add>, %70, %cst_75 [0] : vector<32x128xf32> to vector<128xf32>
    %72 = vector.shape_cast %71 : vector<128xf32> to vector<1x128xf32>
    %73 = arith.mulf %57, %66 : vector<32x128xf32>
    %cst_76 = arith.constant dense<0.000000e+00> : vector<128xf32>
    %74 = vector.multi_reduction <add>, %73, %cst_76 [0] : vector<32x128xf32> to vector<128xf32>
    %75 = vector.shape_cast %74 : vector<128xf32> to vector<1x128xf32>
    %cst_77 = arith.constant 1.000000e-24 : f32
    %76 = vector.broadcast %cst_77 : f32 to vector<1x128xf32>
    %77 = arith.maximumf %69, %76 : vector<1x128xf32>
    %78 = math.rsqrt %77 : vector<1x128xf32>
    %cst_78 = arith.constant 1.000000e-24 : f32
    %79 = vector.broadcast %cst_78 : f32 to vector<1x128xf32>
    %80 = arith.maximumf %72, %79 : vector<1x128xf32>
    %81 = math.rsqrt %80 : vector<1x128xf32>
    %82 = arith.mulf %65, %75 : vector<1x128xf32>
    %83 = arith.mulf %82, %78 : vector<1x128xf32>
    %84 = arith.mulf %83, %81 : vector<1x128xf32>
    %c0_79 = arith.constant 0 : index
    %c0_80 = arith.constant 0 : index
    %85 = vector.load %arg4[%c0_79, %c0_80] : memref<1x128xf32, #tpu.memory_space<vmem>>, vector<1x128xf32>
    %86 = arith.addf %84, %85 : vector<1x128xf32>
    %c0_81 = arith.constant 0 : index
    %c0_82 = arith.constant 0 : index
    %87 = vector.load %arg5[%c0_81, %c0_82] : memref<1x128xf32, #tpu.memory_space<vmem>>, vector<1x128xf32>
    tpu.vector_store %arg5[%c0_81, %c0_82], %86 {strides = array<i32>} : memref<1x128xf32, #tpu.memory_space<vmem>>, vector<1x128xf32>,
    return
  }
  func.func @transform_0(%arg0: i32) -> (i32, i32) {
    %c0_i32 = arith.constant 0 : i32
    %c0_i32_0 = arith.constant 0 : i32
    %c0_i32_1 = arith.constant 0 : i32
    return %c0_i32, %c0_i32_0 : i32, i32
  }
  func.func @transform_1(%arg0: i32) -> (i32, i32) {
    %c0_i32 = arith.constant 0 : i32
    %c0_i32_0 = arith.constant 0 : i32
    %c0_i32_1 = arith.constant 0 : i32
    return %c0_i32, %c0_i32_0 : i32, i32
  }
  func.func @transform_2(%arg0: i32) -> (i32, i32, i32) {
    %c0_i32 = arith.constant 0 : i32
    %c0_i32_0 = arith.constant 0 : i32
    %c0_i32_1 = arith.constant 0 : i32
    %c0_i32_2 = arith.constant 0 : i32
    return %c0_i32, %c0_i32_0, %c0_i32_1 : i32, i32, i32
  }
  func.func @transform_3(%arg0: i32) -> (i32, i32) {
    %c0_i32 = arith.constant 0 : i32
    %c0_i32_0 = arith.constant 0 : i32
    %c0_i32_1 = arith.constant 0 : i32
    return %c0_i32, %c0_i32_0 : i32, i32
  }
  func.func @transform_4(%arg0: i32) -> (i32, i32) {
    %c0_i32 = arith.constant 0 : i32
    %c0_i32_0 = arith.constant 0 : i32
    %c0_i32_1 = arith.constant 0 : i32
    return %c0_i32, %c0_i32_0 : i32, i32
  }
}

</mosaic_0001>

<bundles_post_ra>
// kernel: tpu_custom_call.1
= control target key start
LH: loop header
LB: loop body
LE: loop exit
PB: predicated region body
PF: predicated region fallthrough
CT: control target
= control target key end

     0   :  { %9 = vsyncpa [#allocation5], 0  ;;  %s858_s0 = inlined_call_operand.hbm [shape: f32[128,128], index: 0, kind: input, shape index: {}]   ;;  %s859_s1 = inlined_call_operand.hbm [shape: f32[32,128], index: 1, kind: input, shape index: {}]   ;;  %s860_s2 = inlined_call_operand.hbm [shape: f32[2,128,128], index: 2, kind: input, shape index: {}]   ;;  %s861_s3 = inlined_call_operand.vmem [shape: f32[1,128], index: 3, kind: input, shape index: {}]   ;;  %s862_s4 = inlined_call_operand.hbm [shape: f32[1,128], index: 4, kind: output, shape index: {}]  }
   0x1   :  { %10 = vsyncpa [#allocation8], 0 }
   0x2   :  { %11 = vsyncpa [#allocation6], 0  ;;  %s29_s17 = sshll.u32 %s859_s1, 4  ;;  %s643_s18 = smov [#allocation7]   ;;  %s30_s17 = int_to_ptr.hbm [resolvable:$true] %s29_s17 }
   0x3   :  { %s31_s19 = sshll.u32 %s643_s18, 4  ;;  %s16_s22 = sshll.u32 %s858_s0, 4  ;;  %s32_s19 = int_to_ptr.vmem [resolvable:$true] %s31_s19  ;;  %s17_s22 = int_to_ptr.hbm [resolvable:$true] %s16_s22 }
   0x4   :  { %s644_s23 = smov 128   ;;  %s645_s24 = smov 8  }
   0x5   :  { %37 = dma.hbm_to_vmem [thread:$0]  %s30_s17, 512, %s32_s19, [#allocation8], %s644_s23, %s644_s23, %s645_s24  }
   0x6   :  { %s646_s25 = smov [#allocation4]   ;;  %s42_s29 = sshll.u32 %s860_s2, 4  ;;  %s43_s29 = int_to_ptr.hbm [resolvable:$true] %s42_s29 }
   0x7   :  { %s18_s26 = sshll.u32 %s646_s25, 4  ;;  %s647_s1 = smov [#allocation9]   ;;  %s19_s26 = int_to_ptr.vmem [resolvable:$true] %s18_s26 }
   0x8   :  { %24 = dma.hbm_to_vmem [thread:$0]  %s17_s22, 2048, %s19_s26, [#allocation5], %s644_s23, %s644_s23, %s645_s24  }
   0x9   :  { %s44_s30 = sshll.u32 %s647_s1, 4  ;;  %s45_s30 = int_to_ptr.vmem [resolvable:$true] %s44_s30 }
   0xa   :  { %50 = dma.hbm_to_vmem [thread:$0]  %s43_s29, 4096, %s45_s30, [#allocation8], %s644_s23, %s644_s23, %s645_s24  }
   0xb   :  { %637 = dma.done.wait [#allocation5], 2048  }
   0xc   :  { %638 = vsyncadd [#allocation5], 4294965248 }
   0xd   :  { %639 = dma.done.wait [#allocation8], 4608  }
   0xe   :  { %640 = vsyncadd [#allocation8], 4294962688  ;;  %v686_v0 = vld [vmem:[#allocation4 + $0x78] sm:$0xff]  ;;  %v688_v1 = vld [vmem:[#allocation4 + $0x70] sm:$0xff]  ;;  %v648_v9 = vmov 0.0   ;;  %v649_v11 = vmov 1.0  }
   0xf   :  { %98 = vmatpush.msra.mxu0 %v686_v0  ;;  %511 = vmatpush.msra.mxu3 %v686_v0  ;;  %v692_v2 = vld [vmem:[#allocation4 + $0x68] sm:$0xff]  ;;  %v696_v3 = vld [vmem:[#allocation4 + $0x60] sm:$0xff]  ;;  %v700_v4 = vld [vmem:[#allocation4 + $0x58] sm:$0xff]  ;;  %73 = vst [vmem:[#allocation2 + $0x18] sm:$0xff] %v648_v9  ;;  %s651_s5 = smov [#allocation10]   ;;  %s500_s9 = sshll.u32 %s862_s4, 4  ;;  %s501_s9 = int_to_ptr.hbm [resolvable:$true] %s500_s9 }
  0x10   :  { %v704_v5 = vld [vmem:[#allocation4 + $0x50] sm:$0xff]  ;;  %v708_v6 = vld [vmem:[#allocation4 + $0x48] sm:$0xff]  ;;  %v712_v7 = vld [vmem:[#allocation4 + $0x40] sm:$0xff]  ;;  %75 = vst [vmem:[#allocation2 + $0x18] sm:$0x1] %v649_v11  ;;  %s498_s6 = sshll.u32 %s651_s5, 4  ;;  %s499_s6 = int_to_ptr.vmem [resolvable:$true] %s498_s6 }
  0x11   :  { %99 = vmatpush.msra.mxu0 %v688_v1  ;;  %512 = vmatpush.msra.mxu3 %v688_v1  ;;  %v716_v8 = vld [vmem:[#allocation4 + $0x38] sm:$0xff]  ;;  %v720_v10 = vld [vmem:[#allocation4 + $0x30] sm:$0xff]  ;;  %74 = vst [vmem:[#allocation2 + $0x20] sm:$0xff] %v648_v9  ;;  %v724_v12 = vld [vmem:[#allocation4 + $0x28] sm:$0xff] }
  0x12   :  { %v728_v13 = vld [vmem:[#allocation4 + $0x20] sm:$0xff]  ;;  %v732_v14 = vld [vmem:[#allocation4 + $0x18] sm:$0xff]  ;;  %v736_v15 = vld [vmem:[#allocation4 + $0x10] sm:$0xff] }
  0x13   :  { %100 = vmatpush.msra.mxu0 %v692_v2  ;;  %513 = vmatpush.msra.mxu3 %v692_v2  ;;  %v188_v16 = vld [vmem:[#allocation9 + $0x78] sm:$0xff]  ;;  %v187_v17 = vld [vmem:[#allocation9 + $0x70] sm:$0xff]  ;;  %v741_v19 = vld [vmem:[#allocation4 + $0x8] sm:$0xff] }
  0x14   :  { %v204_v18 = vmul.f32 %v188_v16, %v686_v0  ;;  %v203_v20 = vmul.f32 %v187_v17, %v688_v1  ;;  %v186_v21 = vld [vmem:[#allocation9 + $0x68] sm:$0xff]  ;;  %v746_v22 = vld [vmem:[#allocation4] sm:$0xff]  ;;  %v184_v27 = vld [vmem:[#allocation9 + $0x58] sm:$0xff] }
  0x15   :  { %101 = vmatpush.msra.mxu0 %v696_v3  ;;  %514 = vmatpush.msra.mxu3 %v696_v3  ;;  %v185_v23 = vld [vmem:[#allocation9 + $0x60] sm:$0xff]  ;;  %v752_v25 = vld [vmem:[#allocation7 + $0x8] sm:$0xff]  ;;  %v202_v26 = vmul.f32 %v186_v21, %v692_v2  ;;  %v183_v29 = vld [vmem:[#allocation9 + $0x50] sm:$0xff]  ;;  %v200_v30 = vmul.f32 %v184_v27, %v700_v4 }
  0x16   :  { %211 = vmatpush.msra.mxu1 %v204_v18  ;;  %v750_v24 = vld [vmem:[#allocation7] sm:$0xff]  ;;  %v201_v28 = vmul.f32 %v185_v23, %v696_v3  ;;  %v199_v31 = vmul.f32 %v183_v29, %v704_v5  ;;  %v762_v32 = vld [vmem:[#allocation7 + $0x10] sm:$0xff]  ;;  %v765_v33 = vld [vmem:[#allocation7 + $0x18] sm:$0xff] }
  0x17   :  { %102 = vmatpush.msra.mxu0 %v700_v4  ;;  %515 = vmatpush.msra.mxu3 %v700_v4  ;;  %v768_v34 = vld [vmem:[#allocation2 + $0x18] sm:$0xff]  ;;  %v182_v35 = vld [vmem:[#allocation9 + $0x48] sm:$0xff]  ;;  %v181_v37 = vld [vmem:[#allocation9 + $0x40] sm:$0xff] }
  0x18   :  { %212 = vmatpush.msra.mxu1 %v203_v20  ;;  %v198_v36 = vmul.f32 %v182_v35, %v708_v6  ;;  %v197_v38 = vmul.f32 %v181_v37, %v712_v7  ;;  %v180_v39 = vld [vmem:[#allocation9 + $0x38] sm:$0xff]  ;;  %v179_v41 = vld [vmem:[#allocation9 + $0x30] sm:$0xff]  ;;  %v178_v43 = vld [vmem:[#allocation9 + $0x28] sm:$0xff] }
  0x19   :  { %103 = vmatpush.msra.mxu0 %v704_v5  ;;  %516 = vmatpush.msra.mxu3 %v704_v5  ;;  %v196_v40 = vmul.f32 %v180_v39, %v716_v8  ;;  %v195_v42 = vmul.f32 %v179_v41, %v720_v10  ;;  %v194_v44 = vmul.f32 %v178_v43, %v724_v12  ;;  %v177_v45 = vld [vmem:[#allocation9 + $0x20] sm:$0xff]  ;;  %v176_v47 = vld [vmem:[#allocation9 + $0x18] sm:$0xff]  ;;  %v175_v49 = vld [vmem:[#allocation9 + $0x10] sm:$0xff] }
  0x1a   :  { %213 = vmatpush.msra.mxu1 %v202_v26  ;;  %v193_v46 = vmul.f32 %v177_v45, %v728_v13  ;;  %v192_v48 = vmul.f32 %v176_v47, %v732_v14  ;;  %v191_v50 = vmul.f32 %v175_v49, %v736_v15  ;;  %v174_v51 = vld [vmem:[#allocation9 + $0x8] sm:$0xff]  ;;  %v173_v53 = vld [vmem:[#allocation9] sm:$0xff]  ;;  %v320_v60 = vld [vmem:[#allocation9 + $0xf8] sm:$0xff] }
  0x1b   :  { %104 = vmatpush.msra.mxu0 %v708_v6  ;;  %517 = vmatpush.msra.mxu3 %v708_v6  ;;  %v190_v52 = vmul.f32 %v174_v51, %v741_v19  ;;  %v189_v54 = vmul.f32 %v173_v53, %v746_v22  ;;  %v319_v61 = vld [vmem:[#allocation9 + $0xf0] sm:$0xff]  ;;  %v318_v62 = vld [vmem:[#allocation9 + $0xe8] sm:$0xff]  ;;  %v336_v63 = vmul.f32 %v320_v60, %v686_v0  ;;  %v317_v16 = vld [vmem:[#allocation9 + $0xe0] sm:$0xff] }
  0x1c   :  { %214 = vmatpush.msra.mxu1 %v201_v28  ;;  %v334_v17 = vmul.f32 %v318_v62, %v692_v2  ;;  %v316_v18 = vld [vmem:[#allocation9 + $0xd8] sm:$0xff]  ;;  %v333_v20 = vmul.f32 %v317_v16, %v696_v3  ;;  %v315_v27 = vld [vmem:[#allocation9 + $0xd0] sm:$0xff]  ;;  %v314_v28 = vld [vmem:[#allocation9 + $0xc8] sm:$0xff] }
  0x1d   :  { %105 = vmatpush.msra.mxu0 %v712_v7  ;;  %518 = vmatpush.msra.mxu3 %v712_v7  ;;  %v332_v23 = vmul.f32 %v316_v18, %v700_v4  ;;  %v331_v4 = vmul.f32 %v315_v27, %v704_v5  ;;  %v330_v29 = vmul.f32 %v314_v28, %v708_v6  ;;  %v312_v35 = vld [vmem:[#allocation9 + $0xb8] sm:$0xff]  ;;  %v311_v37 = vld [vmem:[#allocation9 + $0xb0] sm:$0xff]  ;;  %v310_v39 = vld [vmem:[#allocation9 + $0xa8] sm:$0xff] }
  0x1e   :  { %215 = vmatpush.msra.mxu1 %v200_v30  ;;  %343 = vmatpush.msra.mxu2 %v336_v63  ;;  %v313_v30 = vld [vmem:[#allocation9 + $0xc0] sm:$0xff]  ;;  %v326_v5 = vmul.f32 %v310_v39, %v724_v12  ;;  %v308_v41 = vld [vmem:[#allocation9 + $0x98] sm:$0xff]  ;;  %v306_v43 = vld [vmem:[#allocation9 + $0x88] sm:$0xff]  ;;  %v439_v27 = vmul.f32 %v750_v24, %v750_v24 }
  0x1f   :  { %106 = vmatpush.msra.mxu0 %v716_v8  ;;  %519 = vmatpush.msra.mxu3 %v716_v8 }
  0x20   :  { %216 = vmatpush.msra.mxu1 %v199_v31  ;;  %v329_v31 = vmul.f32 %v313_v30, %v712_v7  ;;  %v324_v7 = vmul.f32 %v308_v41, %v732_v14 }
  0x21   :  { %107 = vmatpush.msra.mxu0 %v720_v10  ;;  %520 = vmatpush.msra.mxu3 %v720_v10 }
  0x22   :  { %217 = vmatpush.msra.mxu1 %v198_v36  ;;  %v328_v36 = vmul.f32 %v312_v35, %v716_v8 }
  0x23   :  { %108 = vmatpush.msra.mxu0 %v724_v12  ;;  %521 = vmatpush.msra.mxu3 %v724_v12 }
  0x24   :  { %218 = vmatpush.msra.mxu1 %v197_v38  ;;  %v327_v38 = vmul.f32 %v311_v37, %v720_v10  ;;  %v322_v10 = vmul.f32 %v306_v43, %v741_v19 }
  0x25   :  { %109 = vmatpush.msra.mxu0 %v728_v13  ;;  %522 = vmatpush.msra.mxu3 %v728_v13 }
  0x26   :  { %219 = vmatpush.msra.mxu1 %v196_v40  ;;  %v309_v40 = vld [vmem:[#allocation9 + $0xa0] sm:$0xff] }
  0x27   :  { %110 = vmatpush.msra.mxu0 %v732_v14  ;;  %523 = vmatpush.msra.mxu3 %v732_v14  ;;  %v325_v6 = vmul.f32 %v309_v40, %v728_v13 }
  0x28   :  { %220 = vmatpush.msra.mxu1 %v195_v42  ;;  %v307_v42 = vld [vmem:[#allocation9 + $0x90] sm:$0xff] }
  0x29   :  { %111 = vmatpush.msra.mxu0 %v736_v15  ;;  %524 = vmatpush.msra.mxu3 %v736_v15  ;;  %v323_v8 = vmul.f32 %v307_v42, %v736_v15 }
  0x2a   :  { %221 = vmatpush.msra.mxu1 %v194_v44  ;;  %v305_v44 = vld [vmem:[#allocation9 + $0x80] sm:$0xff] }
  0x2b   :  { %112 = vmatpush.msra.mxu0 %v741_v19  ;;  %525 = vmatpush.msra.mxu3 %v741_v19  ;;  %v321_v12 = vmul.f32 %v305_v44, %v746_v22 }
  0x2c   :  { %222 = vmatpush.msra.mxu1 %v193_v46 }
  0x2d   :  { %113 = vmatpush.msra.mxu0 %v746_v22  ;;  %526 = vmatpush.msra.mxu3 %v746_v22 }
  0x2e   :  { %114 = vmatmul.f32.vlgmr.msra.gmra.mxu0 %v750_v24  ;;  %117 = vmatmul.f32.vlgmr.msra.gmra.mxu3 %v752_v25 }
  0x2f   :  { %223 = vmatpush.msra.mxu1 %v192_v48 }
  0x31   :  { %224 = vmatpush.msra.mxu1 %v191_v50 }
  0x33   :  { %225 = vmatpush.msra.mxu1 %v190_v52 }
  0x35   :  { %226 = vmatpush.msra.mxu1 %v189_v54 }
  0x36   :  { %120 = vmatmul.f32.gmra.mxu3 %v762_v32 }
  0x3e   :  { %123 = vmatmul.f32.gmra.mxu3 %v765_v33 }
  0x46   :  { %126 = vmatmul.f32.gmra.mxu3 %v768_v34 }
  0x4e   :  { %129 = vmatmul.f32.gmra.mxu3 %v648_v9  ;;  %v335_v9 = vmul.f32 %v319_v61, %v688_v1 }
  0x50   :  { %344 = vmatpush.msra.mxu2 %v335_v9 }
  0x52   :  { %345 = vmatpush.msra.mxu2 %v334_v17 }
  0x54   :  { %346 = vmatpush.msra.mxu2 %v333_v20 }
  0x56   :  { %347 = vmatpush.msra.mxu2 %v332_v23 }
  0x58   :  { %348 = vmatpush.msra.mxu2 %v331_v4  ;;  %v440_v4 = vmul.f32 %v752_v25, %v752_v25 }
  0x5a   :  { %349 = vmatpush.msra.mxu2 %v330_v29  ;;  %v441_v29 = vmul.f32 %v762_v32, %v762_v32  ;;  %v443_v30 = vadd.f32 %v440_v4, %v439_v27 }
  0x5c   :  { %350 = vmatpush.msra.mxu2 %v329_v31  ;;  %v442_v31 = vmul.f32 %v765_v33, %v765_v33  ;;  %v444_v35 = vadd.f32 %v443_v30, %v441_v29 }
  0x5e   :  { %351 = vmatpush.msra.mxu2 %v328_v36  ;;  %v445_v39 = vadd.f32 %v444_v35, %v442_v31 }
  0x60   :  { %352 = vmatpush.msra.mxu2 %v327_v38  ;;  %v446_v42 = vrot.slane %v445_v39, 4 }
  0x62   :  { %353 = vmatpush.msra.mxu2 %v326_v5 }
  0x64   :  { %354 = vmatpush.msra.mxu2 %v325_v6 }
  0x66   :  { %355 = vmatpush.msra.mxu2 %v324_v7 }
  0x68   :  { %356 = vmatpush.msra.mxu2 %v323_v8 }
  0x6a   :  { %357 = vmatpush.msra.mxu2 %v322_v10 }
  0x6c   :  { %358 = vmatpush.msra.mxu2 %v321_v12 }
  0xab   :  { %v115_v55 = vpop.f32.mrf.mxu0 }
  0xac   :  { %v782_v56 = vsub.f32 %v115_v55, %v750_v24 }
  0xae   :  { %227 = vmatmul.f32.vlgmr.msra.gmra.mxu1 %v782_v56 }
  0xb1   :  { %v118_v57 = vpop.f32.mrf.mxu3 }
  0xb2   :  { %v786_v58 = vsub.f32 %v118_v57, %v752_v25 }
  0xb6   :  { %230 = vmatmul.f32.gmra.mxu1 %v786_v58 }
  0xb9   :  { %v121_v59 = vpop.f32.mrf.mxu3 }
  0xba   :  { %v792_v11 = vsub.f32 %v121_v59, %v762_v32 }
  0xbe   :  { %233 = vmatmul.f32.gmra.mxu1 %v792_v11 }
  0xc1   :  { %v124_v21 = vpop.f32.mrf.mxu3 }
  0xc2   :  { %v799_v0 = vsub.f32 %v124_v21, %v765_v33 }
  0xc6   :  { %236 = vmatmul.f32.gmra.mxu1 %v799_v0 }
  0xc9   :  { %v127_v1 = vpop.f32.mrf.mxu3 }
  0xca   :  { %137 = vst [vmem:[#allocation3 + $0x28] sm:$0xff] %v127_v1 }
  0xce   :  { %239 = vmatmul.f32.gmra.mxu1 %v768_v34 }
  0xd1   :  { %v803_v2 = vld [vmem:[#allocation3 + $0x28] sm:$0x1]  ;;  %v130_v26 = vpop.f32.mrf.mxu3 }
  0xd2   :  { %156 = vst [vmem:[#allocation2 + $0x20] sm:$0x1] %v803_v2  ;;  %v536_v45 = vld [vmem:[#allocation3 + $0x28] ss:$0 sm:$0xff] }
  0xd3   :  { %v266_v13 = vmul.f32 %v536_v45, %v782_v56  ;;  %v267_v15 = vmul.f32 %v536_v45, %v786_v58  ;;  %v268_v51 = vmul.f32 %v536_v45, %v792_v11  ;;  %v269_v54 = vmul.f32 %v536_v45, %v799_v0 }
  0xd9   :  { %v210_v3 = vld [vmem:[#allocation2 + $0x20] sm:$0xff] }
  0xda   :  { %242 = vmatmul.f32.gmra.mxu1 %v210_v3  ;;  %v256_v61 = vld [vmem:[#allocation2 + $0x20] sm:$0x1] }
 0x12b   :  { %v228_v46 = vpop.f32.mrf.mxu1 }
 0x12c   :  { %v261_v47 = vsub.f32 %v228_v46, %v782_v56  ;;  %v447_v46 = vadd.f32 %v446_v42, %v445_v39 }
 0x12e   :  { %v270_v14 = vsub.f32 %v261_v47, %v266_v13 }
 0x130   :  { %359 = vmatmul.f32.vlgmr.msra.gmra.mxu2 %v270_v14  ;;  %v283_v6 = vadd.f32 %v270_v14, %v782_v56 }
 0x133   :  { %v231_v48 = vpop.f32.mrf.mxu1 }
 0x134   :  { %v262_v49 = vsub.f32 %v231_v48, %v786_v58 }
 0x136   :  { %v271_v50 = vsub.f32 %v262_v49, %v267_v15 }
 0x138   :  { %362 = vmatmul.f32.gmra.mxu2 %v271_v50  ;;  %v284_v5 = vadd.f32 %v271_v50, %v786_v58 }
 0x13b   :  { %v234_v19 = vpop.f32.mrf.mxu1 }
 0x13c   :  { %v263_v22 = vsub.f32 %v234_v19, %v792_v11 }
 0x13e   :  { %v272_v52 = vsub.f32 %v263_v22, %v268_v51 }
 0x140   :  { %365 = vmatmul.f32.gmra.mxu2 %v272_v52  ;;  %v285_v41 = vadd.f32 %v272_v52, %v792_v11 }
 0x143   :  { %v237_v53 = vpop.f32.mrf.mxu1 }
 0x144   :  { %v264_v55 = vsub.f32 %v237_v53, %v799_v0 }
 0x146   :  { %v273_v57 = vsub.f32 %v264_v55, %v269_v54 }
 0x148   :  { %368 = vmatmul.f32.gmra.mxu2 %v273_v57  ;;  %v286_v13 = vadd.f32 %v273_v57, %v799_v0 }
 0x14b   :  { %v240_v59 = vpop.f32.mrf.mxu1 }
 0x14c   :  { %250 = vst [vmem:[#allocation3 + $0x28] sm:$0xff] %v240_v59 }
 0x150   :  { %371 = vmatmul.f32.gmra.mxu2 %v768_v34 }
 0x153   :  { %v830_v17 = vld [vmem:[#allocation3 + $0x28] sm:$0x1] }
 0x154   :  { %v397_v18 = vperm.slane %v830_v17, 0 }
 0x156   :  { %v398_v23 = vmul.f32 %v397_v18, %v270_v14  ;;  %v399_v3 = vmul.f32 %v397_v18, %v271_v50  ;;  %v400_v38 = vmul.f32 %v397_v18, %v272_v52  ;;  %v401_v12 = vmul.f32 %v397_v18, %v273_v57 }
 0x157   :  { %v243_v60 = vpop.f32.mrf.mxu1 }
 0x158   :  { %251 = vst [vmem:[#allocation3 + $0x10] sm:$0xff] %v243_v60 }
 0x15f   :  { %v274_v62 = vld [vmem:[#allocation3 + $0x10] sm:$0x1] }
 0x160   :  { %v275_v63 = vsub.f32 %v274_v62, %v256_v61 }
 0x162   :  { %v827_v9 = vsub.f32 %v275_v63, %v803_v2 }
 0x164   :  { %282 = vst [vmem:[#allocation2 + $0x20] sm:$0x1] %v827_v9 }
 0x16b   :  { %v342_v16 = vld [vmem:[#allocation2 + $0x20] sm:$0xff] }
 0x16c   :  { %374 = vmatmul.f32.gmra.mxu2 %v342_v16 }
 0x1b3   :  { %v360_v20 = vpop.f32.mrf.mxu2 }
 0x1b4   :  { %v393_v21 = vsub.f32 %v360_v20, %v270_v14 }
 0x1b6   :  { %v402_v34 = vsub.f32 %v393_v21, %v398_v23 }
 0x1b8   :  { %v414_v8 = vadd.f32 %v402_v34, %v283_v6 }
 0x1ba   :  { %v426_v48 = vmul.f32 %v414_v8, %v414_v8  ;;  %v452_v62 = vmul.f32 %v414_v8, %v750_v24 }
 0x1bb   :  { %v363_v1 = vpop.f32.mrf.mxu2 }
 0x1bc   :  { %v394_v26 = vsub.f32 %v363_v1, %v271_v50  ;;  %v448_v50 = vrot.slane %v447_v46, 2 }
 0x1be   :  { %v403_v28 = vsub.f32 %v394_v26, %v399_v3  ;;  %v449_v51 = vadd.f32 %v448_v50, %v447_v46 }
 0x1c0   :  { %v415_v7 = vadd.f32 %v403_v28, %v284_v5  ;;  %v450_v53 = vrot.slane %v449_v51, 1 }
 0x1c2   :  { %v427_v45 = vmul.f32 %v415_v7, %v415_v7  ;;  %v451_v59 = vadd.f32 %v450_v53, %v449_v51  ;;  %v453_v0 = vmul.f32 %v415_v7, %v752_v25 }
 0x1c3   :  { %v366_v36 = vpop.f32.mrf.mxu2 }
 0x1c4   :  { %v395_v37 = vsub.f32 %v366_v36, %v272_v52  ;;  %v430_v49 = vadd.f32 %v427_v45, %v426_v48  ;;  %v476_v61 = vmax.f32 %v451_v59, 1e-24  ;;  %v456_v20 = vadd.f32 %v453_v0, %v452_v62 }
 0x1c6   :  { %v404_v40 = vsub.f32 %v395_v37, %v400_v38  ;;  %537 = vrsqrt.f32 %v476_v61  ;;  %v287_v37 = vadd.f32 %v827_v9, %v803_v2  ;;  %vm483_vm0 = vweird.f32 %v476_v61 }
 0x1c8   :  { %v416_v43 = vadd.f32 %v404_v40, %v285_v41 }
 0x1ca   :  { %v428_v15 = vmul.f32 %v416_v43, %v416_v43  ;;  %v454_v63 = vmul.f32 %v416_v43, %v762_v32  ;;  %v388_v32 = vld [vmem:[#allocation2 + $0x20] sm:$0x1]  ;;  %v650_v43 = vmov -1.0  }
 0x1cb   :  { %v369_v10 = vpop.f32.mrf.mxu2 }
 0x1cc   :  { %v396_v44 = vsub.f32 %v369_v10, %v273_v57  ;;  %v431_v14 = vadd.f32 %v430_v49, %v428_v15  ;;  %v457_v21 = vadd.f32 %v456_v20, %v454_v63  ;;  %v538_v34 = vpop.eup %537 }
 0x1cd   :  { %v478_v25 = vmul.f32 %v538_v34, %v476_v61  ;;  %vm484_vm1 = vweird.f32 %v538_v34 }
 0x1ce   :  { %v405_v47 = vsub.f32 %v396_v44, %v401_v12  ;;  %vm485_vm4 = vmor %vm483_vm0, %vm484_vm1  ;;  %v490_v12 = vld [vmem:[%s861_s3] sm:$0x1] }
 0x1cf   :  { %v479_v24 = vmul.f32 %v538_v34, %v478_v25 }
 0x1d0   :  { %v417_v58 = vadd.f32 %v405_v47, %v286_v13 }
 0x1d2   :  { %v429_v56 = vmul.f32 %v417_v58, %v417_v58  ;;  %v455_v18 = vmul.f32 %v417_v58, %v765_v33  ;;  %v480_v33 = vmul.f32 0.5, %v479_v24 }
 0x1d3   :  { %v372_v11 = vpop.f32.mrf.mxu2 }
 0x1d4   :  { %382 = vst [vmem:[#allocation3 + $0x28] sm:$0xff] %v372_v11  ;;  %v432_v19 = vadd.f32 %v431_v14, %v429_v56  ;;  %v458_v23 = vadd.f32 %v457_v21, %v455_v18  ;;  %v481_v5 = vsub.f32 1.5, %v480_v33 }
 0x1d6   :  { %v433_v22 = vrot.slane %v432_v19, 4  ;;  %v459_v26 = vrot.slane %v458_v23, 4  ;;  %v482_v42 = vmul.f32 %v538_v34, %v481_v5 }
 0x1d8   :  { %v434_v52 = vadd.f32 %v433_v22, %v432_v19  ;;  %v460_v4 = vadd.f32 %v459_v26, %v458_v23 }
 0x1da   :  { %v435_v54 = vrot.slane %v434_v52, 2  ;;  %v461_v29 = vrot.slane %v460_v4, 2 }
 0x1dc   :  { %v436_v55 = vadd.f32 %v435_v54, %v434_v52  ;;  %v462_v36 = vadd.f32 %v461_v29, %v460_v4 }
 0x1de   :  { %v437_v60 = vrot.slane %v436_v55, 1  ;;  %v463_v6 = vrot.slane %v462_v36, 1 }
 0x1e0   :  { %v438_v57 = vadd.f32 %v437_v60, %v436_v55  ;;  %v464_v8 = vadd.f32 %v463_v6, %v462_v36 }
 0x1e2   :  { %v465_v16 = vmax.f32 %v438_v57, 1e-24 }
 0x1e4   :  { %539 = vrsqrt.f32 %v465_v16  ;;  %vm472_vm5 = vweird.f32 %v465_v16 }
 0x1ea   :  { %v540_v1 = vpop.eup %539 }
 0x1eb   :  { %v467_v27 = vmul.f32 %v540_v1, %v465_v16  ;;  %vm473_vm2 = vweird.f32 %v540_v1 }
 0x1ec   :  { %vm474_vm6 = vmor %vm472_vm5, %vm473_vm2 }
 0x1ed   :  { %v468_v28 = vmul.f32 %v540_v1, %v467_v27 }
 0x1ef   :  { %v375_v3 = vpop.f32.mrf.mxu2  ;;  %v469_v31 = vmul.f32 0.5, %v468_v28 }
 0x1f0   :  { %383 = vst [vmem:[#allocation3 + $0x10] sm:$0xff] %v375_v3 }
 0x1f1   :  { %v470_v39 = vsub.f32 1.5, %v469_v31 }
 0x1f3   :  { %v471_v7 = vmul.f32 %v540_v1, %v470_v39 }
 0x1f5   :  { %v475_v9 = vsel %vm474_vm6, %v540_v1, %v471_v7 }
 0x1f7   :  { %v406_v30 = vld [vmem:[#allocation3 + $0x10] sm:$0x1] }
 0x1f8   :  { %v407_v35 = vsub.f32 %v406_v30, %v388_v32 }
 0x1fa   :  { %v408_v38 = vsub.f32 %v407_v35, %v830_v17  ;;  %v486_v17 = vsel %vm485_vm4, %v538_v34, %v482_v42 }
 0x1fc   :  { %413 = vst [vmem:[#allocation2 + $0x20] sm:$0x1] %v408_v38  ;;  %v418_v40 = vadd.f32 %v408_v38, %v287_v37 }
 0x1fe   :  { %v419_v41 = vadd.f32 1e-08, %v418_v40 }
 0x200   :  { %vm420_vm3 = vcmp.ge.f32.partialorder %v419_v41, 0.0 }
 0x201   :  { %v421_v10 = vsel %vm420_vm3, 1.0, %v650_v43 }
 0x202   :  { %v487_v2 = vmul.f32 %v464_v8, %v421_v10 }
 0x204   :  { %v488_v44 = vmul.f32 %v487_v2, %v475_v9 }
 0x206   :  { %v489_v45 = vmul.f32 %v488_v44, %v486_v17 }
 0x208   :  { %v491_v46 = vadd.f32 %v490_v12, %v489_v45 }
 0x20a   :  { %492 = vst [vmem:[#allocation10] sm:$0x1] %v491_v46 }
 0x20b   :  { %503 = dma.vmem_to_hbm [thread:$0]  %s499_s6, 16, %s501_s9, [#allocation6]  }
 0x20c   :  { %641 = dma.done.wait [#allocation6], 16  }
 0x20d   :  { %642 = vsyncadd [#allocation6], 4294967280 }
 0x20e   :  { %508 = vsyncpa [#allocation5], 1 }
 0x20f   :  { %509 = vsyncpa [#allocation8], 1 }
 0x210   :  { %510 = vsyncpa [#allocation6], 1 }

</bundles_post_ra>
